<compile_context>
chip_gen: v7x
topology: tpu7x:2x2x1
jax: 0.10.0
libtpu: 0.0.40
codegen_flags: <defaults>
</compile_context>

<pallas_src>
import functools

import jax
import jax.numpy as jnp
from jax.experimental import pallas as pl
from jax.experimental.pallas import tpu as pltpu


def _round_up(x, m):
    return ((x + m - 1) // m) * m


def _choose_tn(d_output, tn):
    """Lane-align tn; keep n_tiles >= 2 (v7x megacore) when it is free."""
    n_align = _round_up(d_output, 128)
    tn = min(_round_up(tn, 128), n_align)
    half = n_align // 2
    if tn >= n_align and n_align >= 256 and half % 128 == 0:
        tn = half
    return tn


def _sublane_multiple(dtype):
    itemsize = jnp.dtype(dtype).itemsize
    if itemsize >= 4:
        return 8
    if itemsize == 2:
        return 16
    return 32


def _make_group_metadata(fwd_expert_count, num_expert, n_tokens, m_tiles, tm):
    """Megablox-style (group, m_tile) visit schedule, all static shapes."""
    counts = fwd_expert_count.astype(jnp.int32)
    ends = jnp.cumsum(counts)
    group_offsets = jnp.concatenate(
        [jnp.zeros((1,), jnp.int32), ends]).astype(jnp.int32)   # [E+1] ownership

    # Schedule coverage: guarantee every m-tile holding a real row (< n_tokens)
    # receives at least one visit even if sum(counts) < n_tokens.  Ownership
    # masking still uses the real group_offsets, so the extra rows come out 0
    # (matching the reference, which zero-fills un-owned rows).
    extra = jnp.maximum(jnp.int32(n_tokens) - ends[-1], 0)
    sched_counts = counts.at[num_expert - 1].add(extra)
    sched_ends = jnp.cumsum(sched_counts)
    sched_starts = jnp.concatenate(
        [jnp.zeros((1,), jnp.int32), sched_ends])[:-1]

    nonzero = sched_counts > 0
    t_first = sched_starts // tm
    t_last = (sched_ends - 1) // tm
    num_visits = jnp.where(nonzero, t_last - t_first + 1, 0).astype(jnp.int32)

    visit_offsets = jnp.concatenate(
        [jnp.zeros((1,), jnp.int32), jnp.cumsum(num_visits)]).astype(jnp.int32)
    num_active = visit_offsets[-1]                  # actual number of visits

    num_logical = m_tiles + num_expert - 1          # static upper bound
    idx = jnp.arange(num_logical, dtype=jnp.int32)
    gid = jnp.sum(idx[:, None] >= visit_offsets[1:][None, :], axis=1)
    gid = jnp.minimum(gid, num_expert - 1).astype(jnp.int32)
    within = idx - visit_offsets[gid]
    mtid = t_first[gid] + within

    # Padding visits (idx >= num_active) repeat the last valid visit so the
    # pipeline keeps the same blocks resident; the kernel skips their compute.
    last = jnp.maximum(num_active - 1, 0)
    gid_pad = gid[last]
    mtid_pad = jnp.clip(mtid[last], 0, m_tiles - 1)
    valid = idx < num_active
    gid = jnp.where(valid, gid, gid_pad).astype(jnp.int32)
    mtid = jnp.clip(jnp.where(valid, mtid, mtid_pad), 0, m_tiles - 1).astype(jnp.int32)

    num_active_arr = jnp.reshape(num_active, (1,)).astype(jnp.int32)
    return gid, mtid, group_offsets, num_active_arr


def _grouped_gemm_kernel(
        group_ids_ref, m_tile_ids_ref, group_offsets_ref, num_active_ref,
        x_ref, w_ref, b_ref, o_ref, acc_ref, *, tm):
    i = pl.program_id(1)      # logical (group, m_tile) visit
    k = pl.program_id(2)      # reduction tile
    nk = pl.num_programs(2)

    @pl.when(i < num_active_ref[0])            # skip padded visits entirely
    def _active():
        @pl.when(k == 0)
        def _zero():
            acc_ref[...] = jnp.zeros_like(acc_ref)

        # Weights arrive pre-transposed/padded: w block is (1, tk, tn) -> x @ W.
        acc_ref[...] += jnp.dot(x_ref[...], w_ref[0],
                                preferred_element_type=jnp.float32)

        @pl.when(k == nk - 1)
        def _finalize():
            g = group_ids_ref[i]
            m_tile = m_tile_ids_ref[i]
            rows = m_tile * tm + jax.lax.broadcasted_iota(jnp.int32, (tm, 1), 0)
            owned = (rows >= group_offsets_ref[g]) & (rows < group_offsets_ref[g + 1])
            res = acc_ref[...] + b_ref[0].astype(jnp.float32)

            first_visit = jnp.logical_or(
                i == 0, m_tile_ids_ref[jnp.maximum(i - 1, 0)] != m_tile)

            # Hot path (non-straddled tile): pure masked store, no o_ref read.
            @pl.when(first_visit)
            def _store():
                o_ref[...] = jnp.where(
                    owned, res, jnp.zeros_like(res)).astype(o_ref.dtype)

            # Straddled tile: merge into what the previous expert already wrote
            # into the still-resident output block.
            @pl.when(jnp.logical_not(first_visit))
            def _merge():
                prev = o_ref[...].astype(jnp.float32)
                o_ref[...] = jnp.where(owned, res, prev).astype(o_ref.dtype)


def prepare_fmoe_params(weight, bias=None, *, tk=512, tn=512,
                        compute_dtype=jnp.bfloat16):
    """One-time parameter prep (call at init, NOT per forward).

    Transposes to [E, d_in, d_out], zero-pads K/N to tile multiples and casts
    to the MXU feed dtype (bf16 by default). Returns (w_t, bias3, meta).
    """
    num_expert, d_output, d_input = weight.shape
    tk = min(_round_up(tk, 128), _round_up(d_input, 128))
    tn = _choose_tn(d_output, tn)
    k_pad = _round_up(d_input, tk)
    n_pad = _round_up(d_output, tn)

    w_t = jnp.transpose(weight, (0, 2, 1))
    w_t = jnp.pad(w_t, ((0, 0), (0, k_pad - d_input), (0, n_pad - d_output)))
    if compute_dtype is not None:
        w_t = w_t.astype(compute_dtype)

    if bias is None:
        bias = jnp.zeros((num_expert, d_output), weight.dtype)
    b3 = jnp.pad(bias, ((0, 0), (0, n_pad - d_output)))
    b3 = b3.reshape(num_expert, 1, n_pad).astype(jnp.float32)

    meta = (int(d_input), int(d_output), int(tk), int(tn))
    return w_t, b3, meta


def fmoe_expert_forward_prepared(inp, fwd_expert_count, w_t, b3, meta, *, tm=512):
    """Hot path: grouped GEMM over already-prepared (transposed/padded/cast)
    expert weights. Only the activations are padded/cast per call."""
    d_input, d_output, tk, tn = meta
    n_tokens = inp.shape[0]
    num_expert, k_pad, n_pad = w_t.shape
    out_dtype = inp.dtype
    x_dtype = w_t.dtype            # feed the MXU with matching operand dtypes

    # tm must respect the sublane packing of the compute dtype (16 for bf16).
    sub = _sublane_multiple(x_dtype)
    tm = max(sub, _round_up(min(tm, _round_up(max(n_tokens, 1), sub)), sub))

    m_pad = _round_up(max(n_tokens, 1), tm)
    m_tiles, k_tiles, n_tiles = m_pad // tm, k_pad // tk, n_pad // tn
    num_logical = m_tiles + num_expert - 1

    # Per-call activation pad + cast (K padding contributes 0 to the dot).
    x = jnp.pad(inp, ((0, m_pad - n_tokens), (0, k_pad - d_input))).astype(x_dtype)

    gids, mtids, goff, nact = _make_group_metadata(
        fwd_expert_count, num_expert, n_tokens, m_tiles, tm)

    kernel = functools.partial(_grouped_gemm_kernel, tm=tm)

    x_bytes = jnp.dtype(x_dtype).itemsize
    w_bytes = jnp.dtype(w_t.dtype).itemsize
    o_bytes = jnp.dtype(out_dtype).itemsize

    # Visit-based cost hint for XLA's scheduler (advisory).
    cost = pl.CostEstimate(
        flops=int(2 * num_logical * tm * k_pad * n_pad),
        transcendentals=0,
        bytes_accessed=int(num_logical * n_tiles * tm * k_pad * x_bytes
                           + num_logical * k_pad * n_pad * w_bytes
                           + m_pad * n_pad * o_bytes),
    )

    # Only override the scoped VMEM limit when large tiles need it; cap at
    # 50 MiB so the same config stays safe on v7x (64 MiB physical per TC).
    vmem_est = (2 * tm * tk * x_bytes + 2 * tk * tn * w_bytes
                + 2 * tm * tn * o_bytes + tm * tn * 4 + 2 * n_pad * 4)
    cp_kwargs = dict(dimension_semantics=("parallel", "arbitrary", "arbitrary"))
    if vmem_est > 24 * 1024 * 1024:
        cp_kwargs["vmem_limit_bytes"] = min(int(vmem_est * 3 // 2),
                                            50 * 1024 * 1024)

    out = pl.pallas_call(
        kernel,
        out_shape=jax.ShapeDtypeStruct((m_pad, n_pad), out_dtype),
        grid_spec=pltpu.PrefetchScalarGridSpec(
            num_scalar_prefetch=4,
            grid=(n_tiles, num_logical, k_tiles),
            in_specs=[
                pl.BlockSpec(
                    (tm, tk),
                    lambda n, i, k, g_r, m_r, o_r, a_r: (m_r[i], k)),
                pl.BlockSpec(
                    (1, tk, tn),
                    lambda n, i, k, g_r, m_r, o_r, a_r: (g_r[i], k, n)),
                pl.BlockSpec(
                    (1, 1, tn),
                    lambda n, i, k, g_r, m_r, o_r, a_r: (g_r[i], 0, n)),
            ],
            out_specs=pl.BlockSpec(
                (tm, tn),
                lambda n, i, k, g_r, m_r, o_r, a_r: (m_r[i], n)),
            scratch_shapes=[pltpu.VMEM((tm, tn), jnp.float32)],
        ),
        compiler_params=pltpu.CompilerParams(**cp_kwargs),
        cost_estimate=cost,
    )(gids, mtids, goff, nact, x, w_t, b3)

    return out[:n_tokens, :d_output]


def fmoe_expert_forward(inp, fwd_expert_count, weight, bias, *,
                        tm=512, tk=512, tn=512, compute_dtype=jnp.bfloat16):
    """Convenience wrapper (prepares params per call). For production, call
    prepare_fmoe_params() once and fmoe_expert_forward_prepared() per step."""
    w_t, b3, meta = prepare_fmoe_params(weight, bias, tk=tk, tn=tn,
                                        compute_dtype=compute_dtype)
    return fmoe_expert_forward_prepared(inp, fwd_expert_count, w_t, b3, meta, tm=tm)


def reference_forward(inp, fwd_expert_count, weight, bias):
    n_tokens = inp.shape[0]
    num_expert = weight.shape[0]
    cum = jnp.cumsum(fwd_expert_count)
    row = jnp.arange(n_tokens)
    ids = jnp.sum(row[:, None] >= cum[None, :], axis=1)
    valid = ids < num_expert
    ids = jnp.minimum(ids, num_expert - 1)
    out = jnp.einsum("ni,noi->no", inp, weight[ids],
                     precision=jax.lax.Precision.HIGHEST) + bias[ids]
    return jnp.where(valid[:, None], out, 0.0)


if __name__ == "__main__":
    key = jax.random.PRNGKey(0)
    k1, k2, k3, k4, k5, k6 = jax.random.split(key, 6)

    # --- Test 1: shapes from the module spec (small), prepared-params path ---
    num_expert, d_input, d_output, n_tokens = 4, 32, 16, 64
    weight = jax.random.normal(k1, (num_expert, d_output, d_input), jnp.float32)
    weight = weight * (1.0 / jnp.sqrt(d_input))
    bias = jax.random.normal(k2, (num_expert, d_output), jnp.float32) * 0.1
    inp = jax.random.normal(k3, (n_tokens, d_input), jnp.float32)
    fwd_expert_count = jnp.array([10, 22, 5, 27], dtype=jnp.int32)
    ref = reference_forward(inp, fwd_expert_count, weight, bias)

    # Production path: weights prepared once (bf16 MXU feed, f32 accumulation).
    w_t, b3, meta = prepare_fmoe_params(weight, bias)       # hoisted out of hot loop
    out = jax.block_until_ready(
        fmoe_expert_forward_prepared(inp, fwd_expert_count, w_t, b3, meta))
    assert out.shape == (n_tokens, d_output)
    assert jnp.allclose(out, ref, atol=1e-1, rtol=1e-1), "test1 bf16 mismatch"

    # f32 operand path (compute_dtype=None) for a tight numerical check.
    out_f32 = jax.block_until_ready(
        fmoe_expert_forward(inp, fwd_expert_count, weight, bias,
                            compute_dtype=None))
    assert jnp.allclose(out_f32, ref, atol=5e-3, rtol=5e-3), "test1 f32 mismatch"

    # --- Test 2: M/K/N tiling, expert-boundary straddling tiles, an empty
    # expert and non-(8,128)-aligned shapes. ---
    num_expert2, d_input2, d_output2, n_tokens2 = 3, 200, 150, 200
    w2 = jax.random.normal(k4, (num_expert2, d_output2, d_input2), jnp.float32)
    w2 = w2 * (1.0 / jnp.sqrt(d_input2))
    b2 = jax.random.normal(k5, (num_expert2, d_output2), jnp.float32) * 0.1
    x2 = jax.random.normal(k6, (n_tokens2, d_input2), jnp.float32)
    counts2 = jnp.array([70, 0, 130], dtype=jnp.int32)
    ref2 = reference_forward(x2, counts2, w2, b2)

    out2_f32 = jax.block_until_ready(
        fmoe_expert_forward(x2, counts2, w2, b2, tm=64, tk=128, tn=128,
                            compute_dtype=None))
    assert out2_f32.shape == (n_tokens2, d_output2)
    assert jnp.allclose(out2_f32, ref2, atol=5e-3, rtol=5e-3), "test2 f32 mismatch"

    out2_bf16 = jax.block_until_ready(
        fmoe_expert_forward(x2, counts2, w2, b2, tm=64, tk=128, tn=128))
    assert jnp.allclose(out2_bf16, ref2, atol=1e-1, rtol=1e-1), "test2 bf16 mismatch"

    # --- Test 3: robustness guard -- sum(counts) < n_tokens; the trailing
    # rows (owned by no expert) must come back zero like the reference. ---
    counts3 = jnp.array([10, 20, 0, 0], dtype=jnp.int32)   # sum=30 < 64 tokens
    ref3 = reference_forward(inp, counts3, weight, bias)
    out3 = jax.block_until_ready(
        fmoe_expert_forward(inp, counts3, weight, bias, compute_dtype=None))
    assert jnp.allclose(out3, ref3, atol=5e-3, rtol=5e-3), "test3 mismatch"

    print("KERNEL_OK")
</pallas_src>

<mosaic_0001>
module attributes {stable_mosaic.version = 11 : i64} {
  func.func @_grouped_gemm_kernel(%arg0: i32, %arg1: i32, %arg2: i32, %arg3: memref<4xi32, #tpu.memory_space<smem>>, %arg4: memref<4xi32, #tpu.memory_space<smem>>, %arg5: memref<5xi32, #tpu.memory_space<smem>>, %arg6: memref<1xi32, #tpu.memory_space<smem>>, %arg7: memref<64x128xbf16, #tpu.memory_space<vmem>>, %arg8: memref<1x128x128xbf16, #tpu.memory_space<vmem>>, %arg9: memref<1x1x128xf32, #tpu.memory_space<vmem>>, %arg10: memref<64x128xf32, #tpu.memory_space<vmem>>, %arg11: memref<64x128xf32, #tpu.memory_space<vmem>>) attributes {dimension_semantics = [#tpu.dimension_semantics<parallel>, #tpu.dimension_semantics<arbitrary>, #tpu.dimension_semantics<arbitrary>], iteration_bounds = array<i64: 1, 4, 1>, scalar_prefetch = 4 : i64, scratch_operands = 1 : i64, tpu.core_type = #tpu.core_type<tc>, window_params = [{transform_indices = @transform_0, window_bounds = array<i64: 64, 128>}, {transform_indices = @transform_1, window_bounds = array<i64: 1, 128, 128>}, {transform_indices = @transform_2, window_bounds = array<i64: 1, 1, 128>}, {transform_indices = @transform_3, window_bounds = array<i64: 64, 128>}]} {
    %c0 = arith.constant 0 : index
    %0 = memref.load %arg6[%c0] : memref<1xi32, #tpu.memory_space<smem>>
    %1 = arith.cmpi slt, %arg1, %0 : i32
    %2 = arith.extui %1 : i1 to i32
    %c0_i32 = arith.constant 0 : i32
    %3 = arith.cmpi ne, %2, %c0_i32 : i32
    scf.if %3 {
      %c0_i32_0 = arith.constant 0 : i32
      %4 = arith.cmpi eq, %arg2, %c0_i32_0 : i32
      %5 = arith.extui %4 : i1 to i32
      %c0_i32_1 = arith.constant 0 : i32
      %6 = arith.cmpi ne, %5, %c0_i32_1 : i32
      scf.if %6 {
        %cst_13 = arith.constant 0.000000e+00 : f32
        %17 = vector.broadcast %cst_13 : f32 to vector<64x128xf32>
        %c0_14 = arith.constant 0 : index
        %c0_15 = arith.constant 0 : index
        %18 = vector.load %arg11[%c0_14, %c0_15] : memref<64x128xf32, #tpu.memory_space<vmem>>, vector<64x128xf32>
        tpu.vector_store %arg11[%c0_14, %c0_15], %17 {strides = array<i32>} : memref<64x128xf32, #tpu.memory_space<vmem>>, vector<64x128xf32>,
      } else {
      }
      %c0_2 = arith.constant 0 : index
      %c0_3 = arith.constant 0 : index
      %7 = vector.load %arg11[%c0_2, %c0_3] : memref<64x128xf32, #tpu.memory_space<vmem>>, vector<64x128xf32>
      %c0_4 = arith.constant 0 : index
      %c0_5 = arith.constant 0 : index
      %8 = vector.load %arg7[%c0_4, %c0_5] : memref<64x128xbf16, #tpu.memory_space<vmem>>, vector<64x128xbf16>
      %c0_6 = arith.constant 0 : index
      %c0_7 = arith.constant 0 : index
      %c0_8 = arith.constant 0 : index
      %9 = vector.load %arg8[%c0_6, %c0_7, %c0_8] : memref<1x128x128xbf16, #tpu.memory_space<vmem>>, vector<1x128x128xbf16>
      %10 = vector.shape_cast %9 : vector<1x128x128xbf16> to vector<128x128xbf16>
      %cst = arith.constant dense<0.000000e+00> : vector<64x128xf32>
      %11 = tpu.matmul %8, %10, %cst {dimension_numbers = #tpu.dot_dimension_numbers<[1], [0], [0], [1], [0, 0, 1, 1], [], []>} : vector<64x128xbf16>, vector<128x128xbf16>, vector<64x128xf32> -> vector<64x128xf32>
      %12 = arith.addf %7, %11 : vector<64x128xf32>
      %c0_9 = arith.constant 0 : index
      %c0_10 = arith.constant 0 : index
      %13 = vector.load %arg11[%c0_9, %c0_10] : memref<64x128xf32, #tpu.memory_space<vmem>>, vector<64x128xf32>
      tpu.vector_store %arg11[%c0_9, %c0_10], %12 {strides = array<i32>} : memref<64x128xf32, #tpu.memory_space<vmem>>, vector<64x128xf32>,
      %c0_i32_11 = arith.constant 0 : i32
      %14 = arith.cmpi eq, %arg2, %c0_i32_11 : i32
      %15 = arith.extui %14 : i1 to i32
      %c0_i32_12 = arith.constant 0 : i32
      %16 = arith.cmpi ne, %15, %c0_i32_12 : i32
      scf.if %16 {
        %17 = arith.index_cast %arg1 : i32 to index
        %18 = memref.load %arg3[%17] : memref<4xi32, #tpu.memory_space<smem>>
        %19 = arith.index_cast %arg1 : i32 to index
        %20 = memref.load %arg4[%19] : memref<4xi32, #tpu.memory_space<smem>>
        %c64_i32 = arith.constant 64 : i32
        %21 = arith.muli %20, %c64_i32 : i32
        %22 = tpu.iota {dimensions = array<i32: 0>} : vector<64x1xi32>
        %23 = vector.broadcast %21 : i32 to vector<64x1xi32>
        %24 = arith.addi %23, %22 : vector<64x1xi32>
        %25 = arith.index_cast %18 : i32 to index
        %26 = memref.load %arg5[%25] : memref<5xi32, #tpu.memory_space<smem>>
        %27 = vector.broadcast %26 : i32 to vector<64x1xi32>
        %28 = arith.cmpi sge, %24, %27 : vector<64x1xi32>
        %c1_i32 = arith.constant 1 : i32
        %29 = arith.addi %18, %c1_i32 : i32
        %30 = arith.index_cast %29 : i32 to index
        %31 = memref.load %arg5[%30] : memref<5xi32, #tpu.memory_space<smem>>
        %32 = vector.broadcast %31 : i32 to vector<64x1xi32>
        %33 = arith.cmpi slt, %24, %32 : vector<64x1xi32>
        %34 = arith.andi %28, %33 : vector<64x1xi1>
        %c0_13 = arith.constant 0 : index
        %c0_14 = arith.constant 0 : index
        %35 = vector.load %arg11[%c0_13, %c0_14] : memref<64x128xf32, #tpu.memory_space<vmem>>, vector<64x128xf32>
        %c0_15 = arith.constant 0 : index
        %c0_16 = arith.constant 0 : index
        %c0_17 = arith.constant 0 : index
        %36 = vector.load %arg9[%c0_15, %c0_16, %c0_17] : memref<1x1x128xf32, #tpu.memory_space<vmem>>, vector<1x1x128xf32>
        %37 = vector.shape_cast %36 : vector<1x1x128xf32> to vector<1x128xf32>
        %38 = vector.broadcast %37 : vector<1x128xf32> to vector<64x128xf32>
        %39 = arith.addf %35, %38 : vector<64x128xf32>
        %c0_i32_18 = arith.constant 0 : i32
        %40 = arith.cmpi eq, %arg1, %c0_i32_18 : i32
        %c1_i32_19 = arith.constant 1 : i32
        %41 = arith.subi %arg1, %c1_i32_19 : i32
        %c0_i32_20 = arith.constant 0 : i32
        %42 = arith.maxsi %41, %c0_i32_20 : i32
        %43 = arith.index_cast %42 : i32 to index
        %44 = memref.load %arg4[%43] : memref<4xi32, #tpu.memory_space<smem>>
        %45 = arith.cmpi ne, %44, %20 : i32
        %46 = arith.ori %40, %45 : i1
        %47 = arith.extui %46 : i1 to i32
        %c0_i32_21 = arith.constant 0 : i32
        %48 = arith.cmpi ne, %47, %c0_i32_21 : i32
        scf.if %48 {
          %cst_23 = arith.constant 0.000000e+00 : f32
          %52 = vector.broadcast %cst_23 : f32 to vector<64x128xf32>
          %53 = vector.shape_cast %34 : vector<64x1xi1> to vector<64x1xi1>
          %54 = vector.broadcast %53 : vector<64x1xi1> to vector<64x128xi1>
          %55 = arith.select %54, %39, %52 : vector<64x128xi1>, vector<64x128xf32>
          %c0_24 = arith.constant 0 : index
          %c0_25 = arith.constant 0 : index
          %56 = vector.load %arg10[%c0_24, %c0_25] : memref<64x128xf32, #tpu.memory_space<vmem>>, vector<64x128xf32>
          tpu.vector_store %arg10[%c0_24, %c0_25], %55 {strides = array<i32>} : memref<64x128xf32, #tpu.memory_space<vmem>>, vector<64x128xf32>,
        } else {
        }
        %true = arith.constant true
        %49 = arith.xori %46, %true : i1
        %50 = arith.extui %49 : i1 to i32
        %c0_i32_22 = arith.constant 0 : i32
        %51 = arith.cmpi ne, %50, %c0_i32_22 : i32
        scf.if %51 {
          %c0_23 = arith.constant 0 : index
          %c0_24 = arith.constant 0 : index
          %52 = vector.load %arg10[%c0_23, %c0_24] : memref<64x128xf32, #tpu.memory_space<vmem>>, vector<64x128xf32>
          %53 = vector.shape_cast %34 : vector<64x1xi1> to vector<64x1xi1>
          %54 = vector.broadcast %53 : vector<64x1xi1> to vector<64x128xi1>
          %55 = arith.select %54, %39, %52 : vector<64x128xi1>, vector<64x128xf32>
          %c0_25 = arith.constant 0 : index
          %c0_26 = arith.constant 0 : index
          %56 = vector.load %arg10[%c0_25, %c0_26] : memref<64x128xf32, #tpu.memory_space<vmem>>, vector<64x128xf32>
          tpu.vector_store %arg10[%c0_25, %c0_26], %55 {strides = array<i32>} : memref<64x128xf32, #tpu.memory_space<vmem>>, vector<64x128xf32>,
        } else {
        }
      } else {
      }
    } else {
    }
    return
  }
  func.func @transform_0(%arg0: i32, %arg1: i32, %arg2: i32, %arg3: memref<4xi32, #tpu.memory_space<smem>>, %arg4: memref<4xi32, #tpu.memory_space<smem>>, %arg5: memref<5xi32, #tpu.memory_space<smem>>, %arg6: memref<1xi32, #tpu.memory_space<smem>>) -> (i32, i32) {
    %0 = arith.index_cast %arg1 : i32 to index
    %1 = memref.load %arg4[%0] : memref<4xi32, #tpu.memory_space<smem>>
    %c0_i32 = arith.constant 0 : i32
    return %1, %arg2 : i32, i32
  }
  func.func @transform_1(%arg0: i32, %arg1: i32, %arg2: i32, %arg3: memref<4xi32, #tpu.memory_space<smem>>, %arg4: memref<4xi32, #tpu.memory_space<smem>>, %arg5: memref<5xi32, #tpu.memory_space<smem>>, %arg6: memref<1xi32, #tpu.memory_space<smem>>) -> (i32, i32, i32) {
    %0 = arith.index_cast %arg1 : i32 to index
    %1 = memref.load %arg3[%0] : memref<4xi32, #tpu.memory_space<smem>>
    %c0_i32 = arith.constant 0 : i32
    return %1, %arg2, %arg0 : i32, i32, i32
  }
  func.func @transform_2(%arg0: i32, %arg1: i32, %arg2: i32, %arg3: memref<4xi32, #tpu.memory_space<smem>>, %arg4: memref<4xi32, #tpu.memory_space<smem>>, %arg5: memref<5xi32, #tpu.memory_space<smem>>, %arg6: memref<1xi32, #tpu.memory_space<smem>>) -> (i32, i32, i32) {
    %0 = arith.index_cast %arg1 : i32 to index
    %1 = memref.load %arg3[%0] : memref<4xi32, #tpu.memory_space<smem>>
    %c0_i32 = arith.constant 0 : i32
    %c0_i32_0 = arith.constant 0 : i32
    return %1, %c0_i32, %arg0 : i32, i32, i32
  }
  func.func @transform_3(%arg0: i32, %arg1: i32, %arg2: i32, %arg3: memref<4xi32, #tpu.memory_space<smem>>, %arg4: memref<4xi32, #tpu.memory_space<smem>>, %arg5: memref<5xi32, #tpu.memory_space<smem>>, %arg6: memref<1xi32, #tpu.memory_space<smem>>) -> (i32, i32) {
    %0 = arith.index_cast %arg1 : i32 to index
    %1 = memref.load %arg4[%0] : memref<4xi32, #tpu.memory_space<smem>>
    %c0_i32 = arith.constant 0 : i32
    return %1, %arg0 : i32, i32
  }
}

</mosaic_0001>

<bundles_post_ra>
// kernel: tpu_custom_call.1
= control target key start
LH: loop header
LB: loop body
LE: loop exit
PB: predicated region body
PF: predicated region fallthrough
CT: control target
= control target key end

     0   :  { %s1835_s0 = inlined_call_operand.vmem [shape: s32[4], index: 0, kind: input, shape index: {}]   ;;  %s1836_s4 = inlined_call_operand.hbm [shape: bf16[64,128], index: 4, kind: input, shape index: {}]   ;;  %s1837_s5 = inlined_call_operand.hbm [shape: bf16[4,128,128], index: 5, kind: input, shape index: {}]   ;;  %s1838_s6 = inlined_call_operand.vmem [shape: f32[4,1,128], index: 6, kind: input, shape index: {}]   ;;  %s1839_s7 = inlined_call_operand.hbm [shape: f32[64,128], index: 7, kind: output, shape index: {}]   ;;  %s1840_s1 = inlined_call_operand.vmem [shape: s32[4], index: 1, kind: input, shape index: {}]   ;;  %s1841_s2 = inlined_call_operand.vmem [shape: s32[5], index: 2, kind: input, shape index: {}]   ;;  %s1842_s3 = inlined_call_operand.<no memory space> [shape: s32[1], index: 3, kind: input, shape index: {}]  }
   0x1   :  { %1852 = sst [smem:[#allocation29_spill]] %s1836_s4  ;;  %s12_s26 = sshll.u32 %s1835_s0, 4  ;;  %s13_s26 = int_to_ptr.vmem [resolvable:$true] %s12_s26 }
   0x2   :  { %s16_s29 = sshll.u32 %s1840_s1, 4  ;;  %s1066_s30 = scalar_lea.vmem %s13_s26, 16  ;;  %s17_s29 = int_to_ptr.vmem [resolvable:$true] %s16_s29 }
   0x3   :  { %p1067_p0 = scmp.ne.s32.totalorder %s13_s26, %s1066_s30  ;;  %p1071_p1 = scmp.lt.s32.totalorder %s13_s26, %s13_s26 }
   0x4   :  { %p1072_p2 = scmp.lt.s32.totalorder %s1066_s30, %s1066_s30 }
   0x6   :  { %p1073_p3 = por %p1072_p2, %p1071_p1 }
   0x8   :  { %p1074_p4 = pnand %p1073_p3, %p1067_p0 }
   0xa   :  { %1077 = shalt.err (!%p1074_p4)  }
   0xb   :  { %s1300_s8 = smov [#allocation4]   ;;  %s1078_s9 = scalar_lea.vmem %s17_s29, 16 }
   0xc   :  { %15 = dma.vmem_to_smem %s13_s26, 16, %s1300_s8, [#allocation3] }
   0xd   :  { %p1079_p5 = scmp.ne.s32.totalorder %s17_s29, %s1078_s9  ;;  %p1083_p6 = scmp.lt.s32.totalorder %s17_s29, %s17_s29 }
   0xe   :  { %p1084_p7 = scmp.lt.s32.totalorder %s1078_s9, %s1078_s9 }
  0x10   :  { %p1085_p8 = por %p1084_p7, %p1083_p6 }
  0x12   :  { %p1086_p9 = pnand %p1085_p8, %p1079_p5 }
  0x14   :  { %1089 = shalt.err (!%p1086_p9)  }
  0x15   :  { %s1301_s0 = smov [#allocation5]   ;;  %s20_s11 = sshll.u32 %s1841_s2, 4  ;;  %s21_s11 = int_to_ptr.vmem [resolvable:$true] %s20_s11 }
  0x16   :  { %19 = dma.vmem_to_smem %s17_s29, 16, %s1301_s0, [#allocation3] }
  0x17   :  { %24 = sst [smem:[#allocation7]] %s1842_s3  ;;  %s1090_s14 = scalar_lea.vmem %s21_s11, 16 }
  0x18   :  { %p1091_p10 = scmp.ne.s32.totalorder %s21_s11, %s1090_s14  ;;  %p1095_p11 = scmp.lt.s32.totalorder %s21_s11, %s21_s11 }
  0x19   :  { %p1096_p12 = scmp.lt.s32.totalorder %s1090_s14, %s1090_s14 }
  0x1b   :  { %p1097_p13 = por %p1096_p12, %p1095_p11 }
  0x1d   :  { %p1098_p0 = pnand %p1097_p13, %p1091_p10 }
  0x1f   :  { %1101 = shalt.err (!%p1098_p0)  }
  0x20   :  { %s1302_s15 = smov [#allocation6]  }
  0x21   :  { %23 = dma.vmem_to_smem %s21_s11, 16, %s1302_s15, [#allocation3] }
  0x22   :  { %1238 = dma.done.wait [#allocation3], 48 }
  0x23   :  { %1239 = vsyncadd [#allocation3], 4294967248 }
  0x24   :  { %26 = sfence }
  0x25   :  { %27 = vsyncpa [#allocation9], 0 }
  0x26   :  { %29 = vsyncpa [#allocation9 + $0x1], 0 }
  0x27   :  { %30 = vsyncpa [#allocation12], 0 }
  0x28   :  { %32 = vsyncpa [#allocation12 + $0x1], 0 }
  0x29   :  { %33 = vsyncpa [#allocation10], 0 }
  0x2a   :  { %35 = vsyncpa [#allocation10 + $0x1], 0  ;;  %s1362_s2 = smov 0   ;;  %s1364_s3 = smov 0  }
  0x2b   :  { %s1366_s16 = smov 0   ;;  %s1368_s17 = smov 0  }
  0x2c   :  { %s1370_s18 = smov 0   ;;  %s1372_s19 = smov 0  }
  0x2d   :  { %s1374_s20 = smov 0   ;;  %s1376_s21 = smov 0  }
  0x2e   :  { %s1378_s22 = smov 0   ;;  %s1380_s23 = smov 0  }
  0x2f   :  { %s1382_s24 = smov 0   ;;  %s1384_s25 = smov 0  }
  0x30 LB: > { %1853 = sst [smem:[#allocation23_spill]] %s1254_s2  ;;  %s832_s26 = sadd.s32 4294967295, %s1298_s25   ;;  %s1298_s25 = sphi %s1384_s25, %s41_s25   ;;  %s1294_s24 = sphi %s1382_s24, %s1913_s24   ;;  %s1290_s23 = sphi %s1380_s23, %s1912_s23   ;;  %s1286_s22 = sphi %s1378_s22, %s1903_s22   ;;  %s1282_s21 = sphi %s1376_s21, %s1911_s21   ;;  %s1278_s20 = sphi %s1374_s20, %s1910_s20   ;;  %s1274_s19 = sphi %s1372_s19, %s1909_s19   ;;  %s1270_s18 = sphi %s1370_s18, %s1908_s18   ;;  %s1266_s17 = sphi %s1368_s17, %s1907_s17   ;;  %s1262_s16 = sphi %s1366_s16, %s1901_s16   ;;  %s1258_s3 = sphi %s1364_s3, %s1906_s3   ;;  %s1254_s2 = sphi %s1362_s2, %s1905_s2  }
  0x31   : > { %1854 = sst [smem:[#allocation24_spill]] %s1262_s16  ;;  %s833_s27 = sadd.s32 4294967294, %s1298_s25  }
  0x32   : > { %1855 = sst [smem:[#allocation25_spill]] %s1286_s22  ;;  %s56_s28 = sadd.s32 1, %s1294_s24 }
  0x33   : > { %s64_s29 = sld [smem:[#allocation5 + %s1294_s24]]  ;;  %p58_p1 = scmp.ge.s32.totalorder %s56_s28, 4 }
  0x34   : > { %s71_s30 = sadd.s32 1, %s1286_s22  ;;  %p78_p2 = scmp.ne.s32.totalorder %s1286_s22, %s1282_s21 }
  0x35   : > { %p1847_p3 = scmp.eq.s32.totalorder %s1298_s25, 0  ;;  %s1915_s28 = smov (%p58_p1, %s56_s28), 0 }
  0x36   : > { %1856 = sst [smem:[#allocation26_spill]] %s1915_s28  ;;  %p84_p5 = scmp.ne.s32.totalorder %s1282_s21, %s1278_s20 }
  0x37   : > { %p1432_p4 = por %p1847_p3, %p78_p2  ;;  %s65_s9 = sld [smem:[#allocation5 + %s1915_s28]] }
  0x38   : > { %p1438_p6 = scmp.eq.s32.totalorder %s832_s26, 0  ;;  %s156_s1 = sld [smem:[#allocation5 + %s1294_s24]] }
  0x39   : > { %s157_s10 = sld [smem:[#allocation5 + %s1915_s28]]  ;;  %s163_s12 = sadd.s32 1, %s1262_s16 }
  0x3a   : > { %p1446_p7 = por %p1438_p6, %p84_p5  ;;  %p173_p8 = scmp.ne.s32.totalorder %s1262_s16, %s1258_s3 }
  0x3b   : > { %p174_p9 = scmp.eq.s32.totalorder %s832_s26, 3  ;;  %p179_p10 = scmp.ne.s32.totalorder %s1258_s3, %s1254_s2 }
  0x3c   : > { %s1859_s11 = scalar_select %p1446_p7, 1, 0 }
  0x3d   : > { %p180_p11 = scmp.eq.s32.totalorder %s833_s27, 3  ;;  %p1455_p12 = por %p174_p9, %p173_p8 }
  0x3e   : > { %s66_s14 = ssub.s32 %s64_s29, %s65_s9  ;;  %p1846_p2 = scmp.lt.s32.totalorder %s1298_s25, 4 }
  0x3f   : > { %s1860_s13 = scalar_select %p1455_p12, 1, 0 }
  0x40   : > { %p1459_p13 = por %p180_p11, %p179_p10  ;;  %p69_p0 = scmp.eq.s32.totalorder %s66_s14, 0 }
  0x41   : > { %s158_s20 = ssub.s32 %s156_s1, %s157_s10  ;;  %s200_s27 = sand.u32 1, %s1286_s22  }
  0x42   : > { %s1861_s15 = scalar_select %p1459_p13, 1, 0 }
  0x43   : > { %p161_p1 = scmp.eq.s32.totalorder %s158_s20, 0  ;;  %p1475_p5 = pnand %p1846_p2, %p1432_p4 }
  0x44   : > { %s1465_s26 = scalar_select %p69_p0, %s1286_s22, %s71_s30  }
  0x45   : > { %s1468_s2 = scalar_select %p161_p1, %s1262_s16, %s163_s12  }
  0x46   : > { %1862 = sst [smem:[#allocation27_spill]] %s1465_s26  ;;  %s836_s9 = sshll.u32 %s200_s27, 5 }
  0x47   : > { %1863 = sst [smem:[#allocation28_spill]] %s1468_s2  ;;  %s204_s30 = scalar_lea.vmem [#allocation8], %s836_s9 }
  0x48   : > { %s922_s1 = scalar_select %p1432_p4, [#allocation5], [#allocation14] }
  0x49   : > { %s923_s10 = scalar_select %p1432_p4, %s1294_s24, 0 }
  0x4a   : > { %s1917_s1 = smov (!%p1846_p2, %s922_s1), [#allocation17]  ;;  %s213_s12 = sshll.u32 %s204_s30, 4  ;;  %s1488_s12 = int_to_ptr.vmem [resolvable:$true] %s213_s12 }
  0x4b   : > { %s1919_s10 = smov (!%p1846_p2, %s923_s10), 0  ;;  %p842_p8 = scmp.ge.s32.totalorder %s1298_s25, 1 }
  0x4c   : > { %s205_s14 = sld [smem:[%s1917_s1 + %s1919_s10]]  ;;  %p257_p9 = scmp.lt.s32.totalorder %s1298_s25, 5 }
  0x4d   : > { %s1497_s8 = sld [smem:[#allocation4 + %s1294_s24]]  ;;  %s1507_s1 = scalar_lea.sflag [#allocation9], %s200_s27 }
  0x4e   : > { %p1492_p10 = pnand %p842_p8, %p257_p9  ;;  %s1866_s4 = sld [smem:[#allocation29_spill]] }
  0x4f   : > { %s1505_s9 = sld [smem:[#allocation4 + %s1915_s28]]  ;;  %p1104_p11 = pneg %p1475_p5 }
  0x50   : > { %s1865_s20 = scalar_select %p1492_p10, 1, 0 }
  0x52   : > { %s867_s26 = sshll.u32 %s205_s14, 9 }
  0x54   : > { %s1502_s16 = scalar_lea.hbm %s1866_s4, %s867_s26  ;;  %s1107_s22 = scalar_lea.hbm %s1866_s4, 512 }
  0x55   : > { %s1102_s10 = scalar_lea.hbm %s1502_s16, 512  ;;  %p1108_p8 = scmp.lt.u32.totalorder %s1502_s16, %s1866_s4 }
  0x56   : > { %p1103_p4 = scmp.ne.s32.totalorder %s1502_s16, %s1102_s10  ;;  %p1109_p9 = scmp.lt.u32.totalorder %s1107_s22, %s1102_s10 }
  0x57   : > { %p1111_p3 = scmp.lt.u32.totalorder %s1102_s10, %s1502_s16 }
  0x58   : > { %p1105_p0 = pnand %p1104_p11, %p1103_p4  ;;  %p1110_p2 = por %p1109_p9, %p1108_p8 }
  0x5a   : > { %p1106_p1 = pneg %p1105_p0  ;;  %p1112_p13 = por %p1111_p3, %p1110_p2 }
  0x5c   : > { %p1113_p12 = pnand %p1112_p13, %p1106_p1 }
  0x5e   : > { %1116 = shalt.err (!%p1113_p12)
}
  0x5f   : > { %s1117_s27 = scalar_lea.vmem %s1488_s12, 512  ;;  %s1303_s30 = smov [#allocation8]  }
  0x60   : > { %p1118_p4 = scmp.ne.s32.totalorder %s1488_s12, %s1117_s27  ;;  %s1122_s2 = sshll.u32 %s1303_s30, 4  ;;  %s1123_s2 = int_to_ptr.vmem [resolvable:$false] %s1122_s2 }
  0x61   : > { %s1124_s26 = scalar_lea.vmem %s1123_s2, 1024  ;;  %p1125_p10 = scmp.lt.s32.totalorder %s1488_s12, %s1123_s2 }
  0x62   : > { %p1120_p0 = pnand %p1118_p4, %p1104_p11  ;;  %p1126_p8 = scmp.lt.s32.totalorder %s1124_s26, %s1117_s27 }
  0x64   : > { %p1121_p7 = pneg %p1120_p0  ;;  %p1127_p9 = por %p1126_p8, %p1125_p10 }
  0x66   : > { %p1128_p3 = pnand %p1127_p9, %p1121_p7 }
  0x68   : > { %1131 = shalt.err (!%p1128_p3)
}
  0x69   : > { %s1851_s10 = smov 64   ;;  %s1305_s22 = smov 4  }
  0x6a   : > { %939 = dma.hbm_to_vmem [thread:$0]  (!%p1475_p5), %s1502_s16, 512, %s1488_s12, %s1507_s1, %s1851_s10, %s1851_s10, %s1305_s22  }
  0x6b   : > { %p110_p7 = scmp.ne.s32.totalorder %s1274_s19, %s1270_s18  ;;  %p116_p12 = scmp.ne.s32.totalorder %s1270_s18, %s1266_s17 }
  0x6c   : > { %p1867_p13 = scmp.eq.s32.totalorder %s1298_s25, 0  ;;  %s223_s14 = sand.u32 1, %s1274_s19  }
  0x6d   : > { %p1547_p10 = por %p116_p12, %p1438_p6  ;;  %s96_s30 = ssub.s32 %s1497_s8, %s1505_s9 }
  0x6e   : > { %p112_p2 = por %p110_p7, %p1867_p13  ;;  %s103_s2 = sadd.s32 1, %s1274_s19 }
  0x6f   : > { %p101_p11 = scmp.eq.s32.totalorder %s96_s30, 0  ;;  %s839_s26 = sshll.u32 %s223_s14, 6 }
  0x70   : > { %s925_s29 = scalar_select %p112_p2, [#allocation4], [#allocation15] }
  0x71   : > { %s1555_s4 = scalar_select %p101_p11, %s1274_s19, %s103_s2  }
  0x72   : > { %s926_s28 = scalar_select %p112_p2, %s1294_s24, 0 }
  0x73   : > { %p1869_p1 = scmp.lt.s32.totalorder %s1298_s25, 4  ;;  %s227_s0 = scalar_lea.vmem [#allocation11], %s839_s26 }
  0x74   : > { %s238_s12 = sshll.u32 %s227_s0, 4  ;;  %s1575_s2 = scalar_lea.sflag [#allocation12], %s223_s14  ;;  %s1568_s12 = int_to_ptr.vmem [resolvable:$true] %s238_s12 }
  0x75   : > { %s1921_s29 = smov (!%p1869_p1, %s925_s29), [#allocation18]  ;;  %p1870_p5 = pmov %p1869_p1 }
  0x76   : > { %p1871_p4 = pmov %p1869_p1 }
  0x77   : > { %s1923_s28 = smov (!%p1870_p5, %s926_s28), 0 }
  0x78   : > { %p1564_p0 = pnand %p1871_p4, %p112_p2  ;;  %s228_s17 = sld [smem:[%s1921_s29 + %s1923_s28]] }
  0x79   : > { %s1137_s29 = scalar_lea.hbm %s1837_s5, 4096 }
  0x7a   : > { %p1134_p8 = pneg %p1564_p0 }
  0x7e   : > { %s868_s8 = sshll.u32 %s228_s17, 10 }
  0x7f   : > { %s1573_s30 = scalar_lea.hbm %s1837_s5, %s868_s8 }
  0x80   : > { %s1132_s10 = scalar_lea.hbm %s1573_s30, 1024  ;;  %p1138_p7 = scmp.lt.u32.totalorder %s1573_s30, %s1837_s5 }
  0x81   : > { %p1133_p6 = scmp.ne.s32.totalorder %s1573_s30, %s1132_s10  ;;  %p1139_p12 = scmp.lt.u32.totalorder %s1137_s29, %s1132_s10 }
  0x82   : > { %p1141_p2 = scmp.lt.u32.totalorder %s1132_s10, %s1573_s30 }
  0x83   : > { %p1135_p9 = pnand %p1134_p8, %p1133_p6  ;;  %p1140_p13 = por %p1139_p12, %p1138_p7 }
  0x85   : > { %p1136_p3 = pneg %p1135_p9  ;;  %p1142_p11 = por %p1141_p2, %p1140_p13 }
  0x87   : > { %p1143_p1 = pnand %p1142_p11, %p1136_p3 }
  0x89   : > { %1146 = shalt.err (!%p1143_p1)
}
  0x8a   : > { %s1147_s14 = scalar_lea.vmem %s1568_s12, 1024  ;;  %s1306_s8 = smov [#allocation11]  }
  0x8b   : > { %p1148_p5 = scmp.ne.s32.totalorder %s1568_s12, %s1147_s14  ;;  %s1152_s9 = sshll.u32 %s1306_s8, 4  ;;  %s1153_s9 = int_to_ptr.vmem [resolvable:$false] %s1152_s9 }
  0x8c   : > { %s1154_s1 = scalar_lea.vmem %s1153_s9, 2048  ;;  %p1155_p9 = scmp.lt.s32.totalorder %s1568_s12, %s1153_s9 }
  0x8d   : > { %p1150_p4 = pnand %p1148_p5, %p1134_p8  ;;  %p1156_p7 = scmp.lt.s32.totalorder %s1154_s1, %s1147_s14 }
  0x8f   : > { %p1151_p6 = pneg %p1150_p4  ;;  %p1157_p12 = por %p1156_p7, %p1155_p9 }
  0x91   : > { %p1158_p13 = pnand %p1157_p12, %p1151_p6 }
  0x93   : > { %1161 = shalt.err (!%p1158_p13)
}
  0x94   : > { %s1873_s10 = smov 64   ;;  %p1874_p8 = scmp.ne.s32.totalorder %s1865_s20, 0 }
  0x95   : > { %944 = dma.hbm_to_vmem [thread:$0]  (!%p1564_p0), %s1573_s30, 1024, %s1568_s12, %s1575_s2, %s1873_s10, %s1873_s10, %s1305_s22  }
  0x96   : > { %261 = sbr.rel (%p1874_p8) target bundleno = 461 (0x1cd), region = 32  ;;  %s263_s28 = sand.u32 (!%p1874_p8), 1, %s1282_s21  }
  0x97   : > { %s843_s26 = sshll.u32 (!%p1874_p8), %s263_s28, 5  ;;  %s264_s29 = scalar_lea.sflag (!%p1874_p8), [#allocation9], %s263_s28 }
  0x98   : > { %s1609_s17 = scalar_lea.vmem (!%p1874_p8), [#allocation8], %s843_s26  ;;  %p1875_p3 = scmp.ne.s32.totalorder (!%p1874_p8), %s1859_s11, 0 }
  0x9d   : > { %1241 = dma.done.wait (%p1875_p3), %s264_s29, 512  }
  0x9e   : > { %1243 = vsyncadd (%p1875_p3), %s264_s29, 4294966784  ;;  %s272_s16 = sand.u32 1, %s1270_s18  }
  0x9f   : > { %s844_s0 = sshll.u32 %s272_s16, 6  ;;  %s273_s22 = scalar_lea.sflag [#allocation12], %s272_s16 }
  0xa0   : > { %s1616_s12 = scalar_lea.vmem [#allocation11], %s844_s0 }
  0xa1   : > { %1245 = dma.done.wait (%p1547_p10), %s273_s22, 1024  }
  0xa2   : > { %1247 = vsyncadd (%p1547_p10), %s273_s22, 4294966272  ;;  %s308_s20 = sand.u32 1, %s1258_s3   ;;  %s315_s30 = sld [smem:[#allocation4 + %s1290_s23]] }
  0xa3   : > { %s326_s2 = sld [smem:[#allocation7]]  ;;  %s845_s11 = sshll.u32 %s308_s20, 6 }
  0xa4   : > { %s1632_s1 = scalar_lea.vmem [#allocation13], %s845_s11 }
  0xa8   : > { %p316_p0 = scmp.lt.s32.totalorder %s315_s30, 3 }
  0xa9   : > { %p846_p10 = scmp.ge.s32.totalorder %s1290_s23, %s326_s2 }
  0xaa   : > { %s1925_s30 = smov (!%p316_p0, %s315_s30), 3  ;;  %v1054_v0 = vld [vmem:[%s1616_s12] sm:$0xff] (!%p846_p10)   ;;  %v1055_v1 = vld [vmem:[%s1616_s12 + $0x8] sm:$0xff] (!%p846_p10)   ;;  %v1056_v2 = vld [vmem:[%s1616_s12 + $0x10] sm:$0xff] (!%p846_p10)   ;;  %s531_s27 = sld [smem:[#allocation4 + %s1290_s23]] (!%p846_p10)  ;;  %v534_v12 = vlaneseq (!%p846_p10)  ;;  %v1877_v32 = vmov (!%p846_p10), 0 }
  0xab   : > { %s321_s9 = scalar_lea.vmem %s1838_s6, %s1925_s30  ;;  %330 = sbr.rel (%p846_p10) target bundleno = 434 (0x1b2), region = 44  ;;  %882 = vmatprep.subr.bf16.mxu0 (!%p846_p10), %v1054_v0  ;;  %906 = vmatprep.subr.bf16.mxu1 (!%p846_p10), %v1054_v0  ;;  %v1057_v3 = vld [vmem:[%s1616_s12 + $0x18] sm:$0xff] (!%p846_p10)   ;;  %v1062_v4 = vld [vmem:[%s1609_s17] sm:$0xff] (!%p846_p10)   ;;  %v1063_v5 = vld [vmem:[%s1609_s17 + $0x10] sm:$0xff] (!%p846_p10)   ;;  %v1879_v33 = vmov (!%p846_p10), 0 }
  0xac   : > { %883 = vmatpush3.bf16.msra.mxu0 (!%p846_p10), %v1054_v0  ;;  %914 = vmatpush3.bf16.msra.mxu1 (!%p846_p10), %v1054_v0  ;;  %v1058_v6 = vld [vmem:[%s1616_s12 + $0x20] sm:$0xff] (!%p846_p10)   ;;  %v1059_v7 = vld [vmem:[%s1616_s12 + $0x28] sm:$0xff] (!%p846_p10)   ;;  %v1060_v8 = vld [vmem:[%s1616_s12 + $0x30] sm:$0xff] (!%p846_p10)   ;;  %s861_s10 = sadd.s32 (!%p846_p10), 4294967295, %s1290_s23  ;;  %s1650_s28 = sld [smem:[#allocation5 + %s1290_s23]] (!%p846_p10)  ;;  %v535_v13 = vshrl.u32 (!%p846_p10), %v534_v12, 7 }
  0xad   : > { %884 = vmatprep.subr.bf16.mxu0 (!%p846_p10), %v1055_v1  ;;  %907 = vmatprep.subr.bf16.mxu1 (!%p846_p10), %v1055_v1  ;;  %v1061_v9 = vld [vmem:[%s1616_s12 + $0x38] sm:$0xff] (!%p846_p10)   ;;  %v1064_v10 = vld [vmem:[%s1609_s17 + $0x8] sm:$0xff] (!%p846_p10)   ;;  %p606_p2 = scmp.gt.s32.totalorder (!%p846_p10), %s861_s10, 0  ;;  %p604_p11 = scmp.eq.s32.totalorder (!%p846_p10), %s1290_s23, 0  ;;  %v860_v40 = vld [vmem:[%s321_s9] ss:$0 sm:$0xff] (!%p846_p10) }
  0xae   : > { %898 = vmatprep.mubr.bf16.mxu0 (!%p846_p10), %v1062_v4  ;;  %902 = vmatprep.mubr.bf16.mxu1 (!%p846_p10), %v1063_v5  ;;  %v1065_v11 = vld [vmem:[%s1609_s17 + $0x18] sm:$0xff] (!%p846_p10)   ;;  %v536_v14 = vadd.s32 (!%p846_p10), 8, %v535_v13  ;;  %v537_v15 = vadd.s32 (!%p846_p10), 16, %v535_v13  ;;  %v538_v16 = vadd.s32 (!%p846_p10), 24, %v535_v13  ;;  %v539_v17 = vadd.s32 (!%p846_p10), 32, %v535_v13 }
  0xaf   : > { %v540_v19 = vadd.s32 (!%p846_p10), 40, %v535_v13  ;;  %v541_v20 = vadd.s32 (!%p846_p10), 48, %v535_v13  ;;  %v542_v24 = vadd.s32 (!%p846_p10), 56, %v535_v13 }
  0xb0   : > { %885 = vmatpush3.bf16.msra.mxu0 (!%p846_p10), %v1055_v1  ;;  %915 = vmatpush3.bf16.msra.mxu1 (!%p846_p10), %v1055_v1  ;;  %s562_s26 = sadd.s32 (!%p846_p10), 1, %s531_s27  ;;  %s552_s29 = sld [smem:[#allocation6 + %s531_s27]] (!%p846_p10) }
  0xb1   : > { %886 = vmatprep.subr.bf16.mxu0 (!%p846_p10), %v1056_v2  ;;  %908 = vmatprep.subr.bf16.mxu1 (!%p846_p10), %v1056_v2  ;;  %s563_s16 = sld [smem:[#allocation6 + %s562_s26]] (!%p846_p10) }
  0xb2   : > { %s1927_s10 = smov (!%p606_p2, %s861_s10), 0  ;;  %s859_s22 = sshll.u32 %s1650_s28, 6 }
  0xb3   : > { %s608_s0 = sld [smem:[#allocation5 + %s1927_s10]]  ;;  %v543_v18 = vstv %s859_s22 }
  0xb4   : > { %887 = vmatpush3.bf16.msra.mxu0 %v1056_v2  ;;  %916 = vmatpush3.bf16.msra.mxu1 %v1056_v2  ;;  %v544_v21 = vadd.s32 %v543_v18, %v535_v13  ;;  %v545_v22 = vadd.s32 %v543_v18, %v536_v14  ;;  %v546_v23 = vadd.s32 %v543_v18, %v537_v15 }
  0xb5   : > { %888 = vmatprep.subr.bf16.mxu0 %v1057_v3  ;;  %909 = vmatprep.subr.bf16.mxu1 %v1057_v3  ;;  %v547_v25 = vadd.s32 %v543_v18, %v538_v16  ;;  %v548_v28 = vadd.s32 %v543_v18, %v539_v17  ;;  %v549_v29 = vadd.s32 %v543_v18, %v540_v19 }
  0xb6   : > { %v553_v26 = vstv %s552_s29  ;;  %v550_v30 = vadd.s32 %v543_v18, %v541_v20  ;;  %v551_v31 = vadd.s32 %v543_v18, %v542_v24 }
  0xb7   : > { %v564_v27 = vstv %s563_s16  ;;  %vm554_vm0 = vcmp.ge.s32.totalorder %v544_v21, %v553_v26  ;;  %vm555_vm1 = vcmp.ge.s32.totalorder %v545_v22, %v553_v26  ;;  %vm556_vm2 = vcmp.ge.s32.totalorder %v546_v23, %v553_v26 }
  0xb8   : > { %889 = vmatpush3.bf16.msra.mxu0 %v1057_v3  ;;  %917 = vmatpush3.bf16.msra.mxu1 %v1057_v3  ;;  %vm565_vm3 = vcmp.lt.s32.totalorder %v544_v21, %v564_v27  ;;  %vm566_vm4 = vcmp.lt.s32.totalorder %v545_v22, %v564_v27  ;;  %vm567_vm5 = vcmp.lt.s32.totalorder %v546_v23, %v564_v27 }
  0xb9   : > { %890 = vmatprep.subr.bf16.mxu0 %v1058_v6  ;;  %910 = vmatprep.subr.bf16.mxu1 %v1058_v6  ;;  %p609_p1 = scmp.ne.s32.totalorder %s608_s0, %s1650_s28  ;;  %vm557_vm6 = vcmp.ge.s32.totalorder %v547_v25, %v553_v26  ;;  %vm568_vm7 = vcmp.lt.s32.totalorder %v547_v25, %v564_v27  ;;  %vm1659_vm8 = vmand %vm554_vm0, %vm565_vm3  ;;  %vm558_vm9 = vcmp.ge.s32.totalorder %v548_v28, %v553_v26 }
  0xba   : > { %v1878_v32 = vsel %vm1659_vm8, 4294967295, %v1877_v32  ;;  %vm569_vm10 = vcmp.lt.s32.totalorder %v548_v28, %v564_v27  ;;  %vm1663_vm11 = vmand %vm555_vm1, %vm566_vm4  ;;  %vm559_vm12 = vcmp.ge.s32.totalorder %v549_v29, %v553_v26  ;;  %vm570_vm13 = vcmp.lt.s32.totalorder %v549_v29, %v564_v27 }
  0xbb   : > { %p1655_p5 = por %p609_p1, %p604_p11  ;;  %v1880_v33 = vsel %vm1663_vm11, 4294967295, %v1879_v33  ;;  %vm1667_vm14 = vmand %vm556_vm2, %vm567_vm5  ;;  %vm560_vm15 = vcmp.ge.s32.totalorder %v550_v30, %v553_v26  ;;  %vm571_vm0 = vcmp.lt.s32.totalorder %v550_v30, %v564_v27  ;;  %vm561_vm8 = vcmp.ge.s32.totalorder %v551_v31, %v553_v26 }
  0xbc   : > { %891 = vmatpush3.bf16.msra.mxu0 %v1058_v6  ;;  %918 = vmatpush3.bf16.msra.mxu1 %v1058_v6  ;;  %vm1671_vm3 = vmand %vm557_vm6, %vm568_vm7  ;;  %vm572_vm1 = vcmp.lt.s32.totalorder %v551_v31, %v564_v27  ;;  %vm1893_vm6 = vnez (%p1655_p5), %v1878_v32  ;;  %vm1894_vm7 = vnez (%p1655_p5), %v1880_v33 }
  0xbd   : > { %892 = vmatprep.subr.bf16.mxu0 %v1059_v7  ;;  %911 = vmatprep.subr.bf16.mxu1 %v1059_v7  ;;  %vm1675_vm4 = vmand %vm558_vm9, %vm569_vm10 }
  0xbe   : > { %vm1679_vm11 = vmand %vm559_vm12, %vm570_vm13 }
  0xbf   : > { %vm1683_vm2 = vmand %vm560_vm15, %vm571_vm0 }
  0xc0   : > { %893 = vmatpush3.bf16.msra.mxu0 %v1059_v7  ;;  %919 = vmatpush3.bf16.msra.mxu1 %v1059_v7  ;;  %vm1687_vm5 = vmand %vm561_vm8, %vm572_vm1 }
  0xc1   : > { %894 = vmatprep.subr.bf16.mxu0 %v1060_v8  ;;  %912 = vmatprep.subr.bf16.mxu1 %v1060_v8 }
  0xc4   : > { %895 = vmatpush3.bf16.msra.mxu0 %v1060_v8  ;;  %920 = vmatpush3.bf16.msra.mxu1 %v1060_v8 }
  0xc5   : > { %896 = vmatprep.subr.bf16.mxu0 %v1061_v9  ;;  %913 = vmatprep.subr.bf16.mxu1 %v1061_v9 }
  0xc8   : > { %897 = vmatpush3.bf16.msra.mxu0 %v1061_v9  ;;  %921 = vmatpush3.bf16.msra.mxu1 %v1061_v9 }
  0xcb   : > { %899 = vmatmul.mubr.bf16.vlgmr.msra.gmra.mrb[0].mxu0 %v1064_v10  ;;  %903 = vmatmul.mubr.bf16.vlgmr.msra.gmra.mrb[0].mxu1 %v1065_v11 }
 0x19c   : > { %613 = sbr.rel (!%p1655_p5) target bundleno = 422 (0x1a6), region = 56 }
 0x19e   : > { %v900_v41 = vpop.f32.mrb[0].mxu0  ;;  %v904_v42 = vpop.f32.mrb[0].mxu1 }
 0x19f   : > { %v598_v43 = vadd.f32 %v900_v41, %v860_v40  ;;  %v602_v44 = vadd.f32 %v904_v42, %v860_v40  ;;  %v481_v45 = vpop.f32.mrb[1].mxu0  ;;  %v497_v46 = vpop.f32.mrb[1].mxu1 }
 0x1a0   : > { %v596_v47 = vadd.f32 %v860_v40, %v481_v45  ;;  %v600_v48 = vadd.f32 %v860_v40, %v497_v46  ;;  %v901_v49 = vpop.f32.mrb[2].mxu0  ;;  %v905_v50 = vpop.f32.mrb[2].mxu1 }
 0x1a1   : > { %v599_v51 = vadd.f32 %v901_v49, %v860_v40  ;;  %v603_v52 = vadd.f32 %v905_v50, %v860_v40  ;;  %v484_v53 = vpop.f32.mrb[3].mxu0  ;;  %v500_v54 = vpop.f32.mrb[3].mxu1  ;;  %v632_v59 = vsel (%p1655_p5), %vm1667_vm14, %v598_v43, 0.0  ;;  %v636_v63 = vsel (%p1655_p5), %vm1683_vm2, %v602_v44, 0.0 }
 0x1a2   : > { %v597_v55 = vadd.f32 %v860_v40, %v484_v53  ;;  %v601_v56 = vadd.f32 %v860_v40, %v500_v54  ;;  %v630_v57 = vsel (%p1655_p5), %vm1893_vm6, %v596_v47, 0.0  ;;  %640 = vst [vmem:[%s1632_s1 + $0x10] sm:$0xff] (%p1655_p5), %v632_v59  ;;  %v634_v61 = vsel (%p1655_p5), %vm1675_vm4, %v600_v48, 0.0  ;;  %644 = vst [vmem:[%s1632_s1 + $0x30] sm:$0xff] (%p1655_p5), %v636_v63 }
 0x1a3   : > { %v633_v60 = vsel %vm1671_vm3, %v599_v51, 0.0  ;;  %638 = vst [vmem:[%s1632_s1] sm:$0xff] %v630_v57  ;;  %v637_v0 = vsel %vm1687_vm5, %v603_v52, 0.0  ;;  %642 = vst [vmem:[%s1632_s1 + $0x20] sm:$0xff] %v634_v61 }
 0x1a4   : > { %v631_v58 = vsel %vm1894_vm7, %v597_v55, 0.0  ;;  %641 = vst [vmem:[%s1632_s1 + $0x18] sm:$0xff] %v633_v60  ;;  %v635_v62 = vsel %vm1679_vm11, %v601_v56, 0.0  ;;  %645 = vst [vmem:[%s1632_s1 + $0x38] sm:$0xff] %v637_v0 }
 0x1a5   : > { %639 = vst [vmem:[%s1632_s1 + $0x8] sm:$0xff] %v631_v58  ;;  %643 = vst [vmem:[%s1632_s1 + $0x28] sm:$0xff] %v635_v62 }
 0x1a6 PF: > { %648 = sbr.rel (%p1655_p5) target bundleno = 434 (0x1b2), region = 60  ;;  %vm1895_vm8 = vnez (!%p1655_p5), %v1878_v32  ;;  %vm1896_vm9 = vnez (!%p1655_p5), %v1880_v33 }
 0x1ab   : > { %v652_v7 = vld [vmem:[%s1632_s1 + $0x18] sm:$0xff] (!%p1655_p5) }
 0x1ac   : > { %v650_v2 = vld [vmem:[%s1632_s1 + $0x8] sm:$0xff] (!%p1655_p5)  ;;  %v651_v3 = vld [vmem:[%s1632_s1 + $0x10] sm:$0xff] (!%p1655_p5)  ;;  %v676_v10 = vsel (!%p1655_p5), %vm1671_vm3, %v599_v51, %v652_v7  ;;  %v656_v14 = vld [vmem:[%s1632_s1 + $0x38] sm:$0xff] (!%p1655_p5) }
 0x1ad   : > { %v649_v1 = vld [vmem:[%s1632_s1] sm:$0xff]  ;;  %v674_v5 = vsel %vm1896_vm9, %v597_v55, %v650_v2  ;;  %v675_v6 = vsel %vm1667_vm14, %v598_v43, %v651_v3  ;;  %v654_v9 = vld [vmem:[%s1632_s1 + $0x28] sm:$0xff]  ;;  %v655_v13 = vld [vmem:[%s1632_s1 + $0x30] sm:$0xff]  ;;  %684 = vst [vmem:[%s1632_s1 + $0x18] sm:$0xff] %v676_v10  ;;  %v680_v16 = vsel %vm1687_vm5, %v603_v52, %v656_v14 }
 0x1ae   : > { %v673_v4 = vsel %vm1895_vm8, %v596_v47, %v649_v1  ;;  %v653_v8 = vld [vmem:[%s1632_s1 + $0x20] sm:$0xff]  ;;  %682 = vst [vmem:[%s1632_s1 + $0x8] sm:$0xff] %v674_v5  ;;  %683 = vst [vmem:[%s1632_s1 + $0x10] sm:$0xff] %v675_v6  ;;  %v678_v12 = vsel %vm1679_vm11, %v601_v56, %v654_v9  ;;  %v679_v15 = vsel %vm1683_vm2, %v602_v44, %v655_v13 }
 0x1af   : > { %681 = vst [vmem:[%s1632_s1] sm:$0xff] %v673_v4  ;;  %v677_v11 = vsel %vm1675_vm4, %v600_v48, %v653_v8  ;;  %686 = vst [vmem:[%s1632_s1 + $0x28] sm:$0xff] %v678_v12 }
 0x1b0   : > { %685 = vst [vmem:[%s1632_s1 + $0x20] sm:$0xff] %v677_v11  ;;  %687 = vst [vmem:[%s1632_s1 + $0x30] sm:$0xff] %v679_v15 }
 0x1b1   : > { %688 = vst [vmem:[%s1632_s1 + $0x38] sm:$0xff] %v680_v16 }
 0x1b2 PF: > { %p1897_p4 = scmp.ne.s32.totalorder %s1860_s13, 0  ;;  %s705_s14 = sshll.u32 %s1632_s1, 4  ;;  %s1762_s14 = int_to_ptr.vmem [resolvable:$true] %s705_s14 }
 0x1b3   : > { %s1771_s28 = scalar_lea.sflag [#allocation10], %s308_s20  ;;  %s1162_s26 = scalar_lea.vmem %s1762_s14, 1024 }
 0x1b4   : > { %s930_s30 = scalar_select %p1897_p4, [#allocation5], [#allocation16] }
 0x1b5   : > { %s1929_s23 = smov (!%p1897_p4, %s1290_s23), 0  ;;  %p1163_p6 = scmp.ne.s32.totalorder %s1762_s14, %s1162_s26 }
 0x1b6   : > { %s697_s11 = sld [smem:[%s930_s30 + %s1929_s23]]  ;;  %s1307_s23 = smov [#allocation13]  }
 0x1b7   : > { %p1164_p9 = pnand %p1163_p6, %p1897_p4  ;;  %s1166_s1 = sshll.u32 %s1307_s23, 4  ;;  %s1167_s1 = int_to_ptr.vmem [resolvable:$false] %s1166_s1 }
 0x1b8   : > { %s1168_s29 = scalar_lea.vmem %s1167_s1, 2048  ;;  %p1169_p12 = scmp.lt.s32.totalorder %s1762_s14, %s1167_s1 }
 0x1b9   : > { %p1165_p7 = pneg %p1164_p9  ;;  %p1170_p13 = scmp.lt.s32.totalorder %s1168_s29, %s1162_s26 }
 0x1bb   : > { %p1171_p8 = por %p1170_p13, %p1169_p12 }
 0x1bc   : > { %s869_s8 = sshll.u32 %s697_s11, 10 }
 0x1bd   : > { %s1767_s10 = scalar_lea.hbm %s1839_s7, %s869_s8  ;;  %p1172_p3 = pnand %p1171_p8, %p1165_p7 }
 0x1bf   : > { %1175 = shalt.err (!%p1172_p3)
}
 0x1c0   : > { %s1176_s20 = scalar_lea.hbm %s1767_s10, 1024  ;;  %s1180_s22 = scalar_lea.hbm %s1839_s7, 1024 }
 0x1c1   : > { %p1177_p0 = scmp.ne.s32.totalorder %s1767_s10, %s1176_s20  ;;  %p1181_p11 = scmp.lt.u32.totalorder %s1767_s10, %s1839_s7 }
 0x1c2   : > { %p1182_p1 = scmp.lt.u32.totalorder %s1180_s22, %s1176_s20  ;;  %p1184_p6 = scmp.lt.u32.totalorder %s1176_s20, %s1767_s10 }
 0x1c3   : > { %p1178_p10 = pnand %p1177_p0, %p1897_p4 }
 0x1c4   : > { %p1183_p5 = por %p1182_p1, %p1181_p11 }
 0x1c5   : > { %p1179_p2 = pneg %p1178_p10 }
 0x1c6   : > { %p1185_p9 = por %p1184_p6, %p1183_p5 }
 0x1c8   : > { %p1186_p7 = pnand %p1185_p9, %p1179_p2 }
 0x1ca   : > { %1189 = shalt.err (!%p1186_p7)
}
 0x1cb   : > { %s1308_s2 = smov 128   ;;  %s1309_s30 = smov 8  }
 0x1cc   : > { %932 = dma.vmem_to_hbm [thread:$0]  (%p1897_p4), %s1762_s14, 1024, %s1767_s10, %s1771_s28, %s1308_s2, %s1308_s2, %s1309_s30  }
 0x1cd PF: > { %s1898_s11 = sld [smem:[#allocation23_spill]]  ;;  %p950_p12 = scmp.ge.s32.totalorder %s1298_s25, 2 }
 0x1ce   : > { %p1899_p13 = scmp.ne.s32.totalorder %s1861_s15, 0 }
 0x1d0   : > { %p946_p8 = pnand %p950_p12, %p1899_p13 }
 0x1d3   : > { %s720_s8 = sand.u32 1, %s1898_s11  }
 0x1d4   : > { %s721_s9 = scalar_lea.sflag [#allocation10], %s720_s8 }
 0x1d5   : > { %1249 = dma.done.wait (!%p946_p8), %s721_s9, 1024  }
 0x1d6   : > { %1251 = vsyncadd (!%p946_p8), %s721_s9, 4294966272  ;;  %s41_s25 = sadd.s32 1, %s1298_s25   ;;  %s1900_s27 = sld [smem:[#allocation24_spill]] }
 0x1d7   : > { %p38_p3 = scmp.ge.s32.totalorder %s41_s25, 6   ;;  %s1901_s16 = sld [smem:[#allocation28_spill]] }
 0x1d8   : > { %s1902_s13 = sld [smem:[#allocation25_spill]]  ;;  %s1903_s22 = sld [smem:[#allocation27_spill]] }
 0x1d9   : > { %s1904_s14 = sld [smem:[#allocation26_spill]]  ;;  %s1905_s2 = smov %s1258_s3 }
 0x1da   : > { %s1907_s17 = smov %s1270_s18  ;;  %s1908_s18 = smov %s1274_s19 }
 0x1db   : > { %s1909_s19 = smov %s1555_s4  ;;  %s1910_s20 = smov %s1282_s21 }
 0x1dc   : > { %s1906_s3 = smov %s1900_s27  ;;  %s1912_s23 = smov %s1294_s24 }
 0x1dd   :  { %40 = sbr.rel (!%p38_p3) target bundleno = 48 (0x30), region = 113 }
 0x1de   : > { %s1911_s21 = smov %s1902_s13 }
 0x1df   : > { %s1913_s24 = smov %s1904_s14 }
 0x1e4   :  { %726 = vsyncpa [#allocation9], 1 }
 0x1e5   :  { %728 = vsyncpa [#allocation9 + $0x1], 1 }
 0x1e6   :  { %729 = vsyncpa [#allocation12], 1 }
 0x1e7   :  { %731 = vsyncpa [#allocation12 + $0x1], 1 }
 0x1e8   :  { %732 = vsyncpa [#allocation10], 1 }
 0x1e9   :  { %734 = vsyncpa [#allocation10 + $0x1], 1 }

</bundles_post_ra>
